<compile_context>
chip_gen: v7x
topology: tpu7x:2x2x1
jax: 0.10.0
libtpu: 0.0.40
codegen_flags: <defaults>
</compile_context>

<pallas_src>
import jax
import jax.numpy as jnp
from jax.experimental import pallas as pl
from jax.experimental.pallas import tpu as pltpu


def _qvalue_kernel(x_ref, a_ref, w1_ref, b1_ref, w2_ref, b2_ref,
                   w3_ref, b3_ref, out_ref):
    """One batch tile with batch on the lane axis: 3 small-LHS MXU dots."""
    # Flip batch onto lanes: (TB, S) -> (S, TB), (TB, A) -> (A, TB);
    # sublane-concat to the fused fc1 input (S+A, TB).  XLU work, rides in slack.
    cat_t = jnp.concatenate([x_ref[...].T, a_ref[...].T], axis=0)

    # fc1: (H, S+A) @ (S+A, TB) -> (H, TB); bias is an (H, 1) column.
    h1 = jnp.dot(w1_ref[...], cat_t, preferred_element_type=jnp.float32)
    h1 = jnp.maximum(h1 + b1_ref[...], 0.0)

    # fc2: (H, H) @ (H, TB) -> (H, TB)
    h2 = jnp.dot(w2_ref[...], h1, preferred_element_type=jnp.float32)
    h2 = jnp.maximum(h2 + b2_ref[...], 0.0)

    # fc_out: (1, H) @ (H, TB) -> (1, TB); lane-dense store + SMEM scalar bias.
    q = jnp.dot(w3_ref[...], h2, preferred_element_type=jnp.float32)
    out_ref[...] = (q + b3_ref[0]).astype(out_ref.dtype)


def qvalue_forward(x, a, params, *, tb=2048):
    """x: (B, state_dim) f32, a: (B, action_dim) f32 -> (B, 1) f32."""
    w1, b1, w2, b2, w3, b3 = params
    B, S = x.shape
    A = a.shape[1]
    H = w1.shape[0]

    # Lane-major batch tile: multiple of 128 (dense lanes / unmasked stores).
    tb = max(128, (int(tb) // 128) * 128)
    if B > 128:
        # Give v7x's two TensorCores >=2 grid steps when the batch allows it
        # (costs one ~0.35us step on single-TC v5e/v6e, negligible).
        tb = min(tb, max(128, pl.cdiv(pl.cdiv(B, 2), 128) * 128))
    tb = min(tb, pl.cdiv(B, 128) * 128)            # don't exceed padded batch
    bp = pl.cdiv(B, tb) * tb

    if bp != B:                                    # pad ragged batch, slice later
        pad = bp - B
        x = jnp.pad(x, ((0, pad), (0, 0)))
        a = jnp.pad(a, ((0, pad), (0, 0)))

    grid = (bp // tb,)
    const = lambda r, c: pl.BlockSpec((r, c), lambda i: (0, 0))

    out = pl.pallas_call(
        _qvalue_kernel,
        out_shape=jax.ShapeDtypeStruct((1, bp), jnp.float32),
        grid=grid,
        in_specs=[
            pl.BlockSpec((tb, S), lambda i: (i, 0)),              # x batch tile
            pl.BlockSpec((tb, A), lambda i: (i, 0)),              # a batch tile
            const(H, S + A),                                      # fc1 weight (torch layout)
            const(H, 1),                                          # fc1 bias column
            const(H, H),                                          # fc2 weight
            const(H, 1),                                          # fc2 bias column
            const(1, H),                                          # fc_out weight row
            pl.BlockSpec(memory_space=pltpu.MemorySpace.SMEM),    # fc_out bias scalar (1,)
        ],
        out_specs=pl.BlockSpec((1, tb), lambda i: (0, i)),        # lane-dense q row
        compiler_params=pltpu.CompilerParams(
            dimension_semantics=("parallel",)),
    )(x, a, w1, b1, w2, b2, w3, b3)

    return out[0, :B].reshape(B, 1)


def init_params(key, state_dim, hidden_dim, action_dim):
    """torch.nn.Linear-style init (uniform +/- 1/sqrt(fan_in)), torch layout.

    Weights are (out_features, in_features); fc1/fc2 biases are stored as
    (H, 1) columns (kernel broadcasts over lanes); fc_out bias is a flat (1,)
    scalar that lives in SMEM.
    """
    ks = jax.random.split(key, 6)

    def linear(kw, kb, fan_in, fan_out):
        bound = 1.0 / jnp.sqrt(jnp.float32(fan_in))
        w = jax.random.uniform(kw, (fan_out, fan_in), jnp.float32, -bound, bound)
        b = jax.random.uniform(kb, (fan_out,), jnp.float32, -bound, bound)
        return w, b

    w1, b1 = linear(ks[0], ks[1], state_dim + action_dim, hidden_dim)
    w2, b2 = linear(ks[2], ks[3], hidden_dim, hidden_dim)
    w3, b3 = linear(ks[4], ks[5], hidden_dim, 1)

    return (w1, b1.reshape(hidden_dim, 1),
            w2, b2.reshape(hidden_dim, 1),
            w3, b3)                                 # b3: shape (1,)


def qvalue_reference(x, a, params):
    """Pure-JAX reference (mirrors the PyTorch forward) for correctness."""
    w1, b1, w2, b2, w3, b3 = params
    cat = jnp.concatenate([x, a], axis=1)
    h1 = jnp.maximum(cat @ w1.T + b1[:, 0], 0.0)
    h2 = jnp.maximum(h1 @ w2.T + b2[:, 0], 0.0)
    return h2 @ w3.T + b3


if __name__ == "__main__":
    state_dim, hidden_dim, action_dim = 16, 32, 4
    batch = 8

    key = jax.random.PRNGKey(0)
    k_params, k_x, k_a = jax.random.split(key, 3)

    params = init_params(k_params, state_dim, hidden_dim, action_dim)
    x = jax.random.normal(k_x, (batch, state_dim), jnp.float32)
    a = jax.random.normal(k_a, (batch, action_dim), jnp.float32)

    q = qvalue_forward(x, a, params)
    jax.block_until_ready(q)

    q_ref = qvalue_reference(x, a, params)
    assert q.shape == (batch, 1), q.shape
    assert jnp.allclose(q, q_ref, atol=1e-5, rtol=1e-5), "mismatch vs reference"

    print("KERNEL_OK")
</pallas_src>

<mosaic_0001>
module attributes {stable_mosaic.version = 11 : i64} {
  func.func @_qvalue_kernel(%arg0: i32, %arg1: memref<128x16xf32, #tpu.memory_space<vmem>>, %arg2: memref<128x4xf32, #tpu.memory_space<vmem>>, %arg3: memref<32x20xf32, #tpu.memory_space<vmem>>, %arg4: memref<32x1xf32, #tpu.memory_space<vmem>>, %arg5: memref<32x32xf32, #tpu.memory_space<vmem>>, %arg6: memref<32x1xf32, #tpu.memory_space<vmem>>, %arg7: memref<1x32xf32, #tpu.memory_space<vmem>>, %arg8: memref<1xf32, #tpu.memory_space<smem>>, %arg9: memref<1x128xf32, #tpu.memory_space<vmem>>) attributes {dimension_semantics = [#tpu.dimension_semantics<parallel>], iteration_bounds = array<i64: 1>, scalar_prefetch = 0 : i64, scratch_operands = 0 : i64, tpu.core_type = #tpu.core_type<tc>, window_params = [{transform_indices = @transform_0, window_bounds = array<i64: 128, 16>}, {transform_indices = @transform_1, window_bounds = array<i64: 128, 4>}, {pipeline_mode = #tpu.pipeline_mode<synchronous>, transform_indices = @transform_2, window_bounds = array<i64: 32, 20>}, {pipeline_mode = #tpu.pipeline_mode<synchronous>, transform_indices = @transform_3, window_bounds = array<i64: 32, 1>}, {pipeline_mode = #tpu.pipeline_mode<synchronous>, transform_indices = @transform_4, window_bounds = array<i64: 32, 32>}, {pipeline_mode = #tpu.pipeline_mode<synchronous>, transform_indices = @transform_5, window_bounds = array<i64: 32, 1>}, {pipeline_mode = #tpu.pipeline_mode<synchronous>, transform_indices = @transform_6, window_bounds = array<i64: 1, 32>}, {transform_indices = @transform_7, window_bounds = array<i64: 1>}, {transform_indices = @transform_8, window_bounds = array<i64: 1, 128>}]} {
    %c0 = arith.constant 0 : index
    %c0_0 = arith.constant 0 : index
    %0 = vector.load %arg1[%c0, %c0_0] : memref<128x16xf32, #tpu.memory_space<vmem>>, vector<128x16xf32>
    %1 = tpu.transpose %0, [1, 0] : vector<128x16xf32> -> vector<16x128xf32>
    %c0_1 = arith.constant 0 : index
    %c0_2 = arith.constant 0 : index
    %2 = vector.load %arg2[%c0_1, %c0_2] : memref<128x4xf32, #tpu.memory_space<vmem>>, vector<128x4xf32>
    %3 = tpu.transpose %2, [1, 0] : vector<128x4xf32> -> vector<4x128xf32>
    %4 = tpu.concatenate %1, %3 in 0 : vector<16x128xf32>, vector<4x128xf32> -> vector<20x128xf32>
    %c0_3 = arith.constant 0 : index
    %c0_4 = arith.constant 0 : index
    %5 = vector.load %arg3[%c0_3, %c0_4] : memref<32x20xf32, #tpu.memory_space<vmem>>, vector<32x20xf32>
    %cst = arith.constant dense<0.000000e+00> : vector<32x128xf32>
    %6 = tpu.matmul %5, %4, %cst {dimension_numbers = #tpu.dot_dimension_numbers<[1], [0], [0], [1], [0, 0, 1, 1], [], []>} : vector<32x20xf32>, vector<20x128xf32>, vector<32x128xf32> -> vector<32x128xf32>
    %c0_5 = arith.constant 0 : index
    %c0_6 = arith.constant 0 : index
    %7 = vector.load %arg4[%c0_5, %c0_6] : memref<32x1xf32, #tpu.memory_space<vmem>>, vector<32x1xf32>
    %8 = vector.broadcast %7 : vector<32x1xf32> to vector<32x128xf32>
    %9 = arith.addf %6, %8 : vector<32x128xf32>
    %cst_7 = arith.constant 0.000000e+00 : f32
    %10 = vector.broadcast %cst_7 : f32 to vector<32x128xf32>
    %11 = arith.maximumf %9, %10 : vector<32x128xf32>
    %c0_8 = arith.constant 0 : index
    %c0_9 = arith.constant 0 : index
    %12 = vector.load %arg5[%c0_8, %c0_9] : memref<32x32xf32, #tpu.memory_space<vmem>>, vector<32x32xf32>
    %cst_10 = arith.constant dense<0.000000e+00> : vector<32x128xf32>
    %13 = tpu.matmul %12, %11, %cst_10 {dimension_numbers = #tpu.dot_dimension_numbers<[1], [0], [0], [1], [0, 0, 1, 1], [], []>} : vector<32x32xf32>, vector<32x128xf32>, vector<32x128xf32> -> vector<32x128xf32>
    %c0_11 = arith.constant 0 : index
    %c0_12 = arith.constant 0 : index
    %14 = vector.load %arg6[%c0_11, %c0_12] : memref<32x1xf32, #tpu.memory_space<vmem>>, vector<32x1xf32>
    %15 = vector.broadcast %14 : vector<32x1xf32> to vector<32x128xf32>
    %16 = arith.addf %13, %15 : vector<32x128xf32>
    %cst_13 = arith.constant 0.000000e+00 : f32
    %17 = vector.broadcast %cst_13 : f32 to vector<32x128xf32>
    %18 = arith.maximumf %16, %17 : vector<32x128xf32>
    %c0_14 = arith.constant 0 : index
    %c0_15 = arith.constant 0 : index
    %19 = vector.load %arg7[%c0_14, %c0_15] : memref<1x32xf32, #tpu.memory_space<vmem>>, vector<1x32xf32>
    %cst_16 = arith.constant dense<0.000000e+00> : vector<1x128xf32>
    %20 = tpu.matmul %19, %18, %cst_16 {dimension_numbers = #tpu.dot_dimension_numbers<[1], [0], [0], [1], [0, 0, 1, 1], [], []>} : vector<1x32xf32>, vector<32x128xf32>, vector<1x128xf32> -> vector<1x128xf32>
    %c0_17 = arith.constant 0 : index
    %21 = memref.load %arg8[%c0_17] : memref<1xf32, #tpu.memory_space<smem>>
    %22 = vector.broadcast %21 : f32 to vector<1x128xf32>
    %23 = arith.addf %20, %22 : vector<1x128xf32>
    %c0_18 = arith.constant 0 : index
    %c0_19 = arith.constant 0 : index
    %24 = vector.load %arg9[%c0_18, %c0_19] : memref<1x128xf32, #tpu.memory_space<vmem>>, vector<1x128xf32>
    tpu.vector_store %arg9[%c0_18, %c0_19], %23 {strides = array<i32>} : memref<1x128xf32, #tpu.memory_space<vmem>>, vector<1x128xf32>,
    return
  }
  func.func @transform_0(%arg0: i32) -> (i32, i32) {
    %c0_i32 = arith.constant 0 : i32
    %c0_i32_0 = arith.constant 0 : i32
    return %arg0, %c0_i32 : i32, i32
  }
  func.func @transform_1(%arg0: i32) -> (i32, i32) {
    %c0_i32 = arith.constant 0 : i32
    %c0_i32_0 = arith.constant 0 : i32
    return %arg0, %c0_i32 : i32, i32
  }
  func.func @transform_2(%arg0: i32) -> (i32, i32) {
    %c0_i32 = arith.constant 0 : i32
    %c0_i32_0 = arith.constant 0 : i32
    %c0_i32_1 = arith.constant 0 : i32
    return %c0_i32, %c0_i32_0 : i32, i32
  }
  func.func @transform_3(%arg0: i32) -> (i32, i32) {
    %c0_i32 = arith.constant 0 : i32
    %c0_i32_0 = arith.constant 0 : i32
    %c0_i32_1 = arith.constant 0 : i32
    return %c0_i32, %c0_i32_0 : i32, i32
  }
  func.func @transform_4(%arg0: i32) -> (i32, i32) {
    %c0_i32 = arith.constant 0 : i32
    %c0_i32_0 = arith.constant 0 : i32
    %c0_i32_1 = arith.constant 0 : i32
    return %c0_i32, %c0_i32_0 : i32, i32
  }
  func.func @transform_5(%arg0: i32) -> (i32, i32) {
    %c0_i32 = arith.constant 0 : i32
    %c0_i32_0 = arith.constant 0 : i32
    %c0_i32_1 = arith.constant 0 : i32
    return %c0_i32, %c0_i32_0 : i32, i32
  }
  func.func @transform_6(%arg0: i32) -> (i32, i32) {
    %c0_i32 = arith.constant 0 : i32
    %c0_i32_0 = arith.constant 0 : i32
    %c0_i32_1 = arith.constant 0 : i32
    return %c0_i32, %c0_i32_0 : i32, i32
  }
  func.func @transform_7(%arg0: i32) -> i32 {
    %c0_i32 = arith.constant 0 : i32
    %c0_i32_0 = arith.constant 0 : i32
    return %c0_i32 : i32
  }
  func.func @transform_8(%arg0: i32) -> (i32, i32) {
    %c0_i32 = arith.constant 0 : i32
    %c0_i32_0 = arith.constant 0 : i32
    return %c0_i32, %arg0 : i32, i32
  }
}

</mosaic_0001>

<bundles_post_ra>
// kernel: tpu_custom_call.1
= control target key start
LH: loop header
LB: loop body
LE: loop exit
PB: predicated region body
PF: predicated region fallthrough
CT: control target
= control target key end

     0   :  { %s819_s0 = inlined_call_operand.vmem [shape: f32[128,16], index: 0, kind: input, shape index: {}]   ;;  %s820_s1 = inlined_call_operand.vmem [shape: f32[128,4], index: 1, kind: input, shape index: {}]   ;;  %s821_s2 = inlined_call_operand.vmem [shape: f32[32,20], index: 2, kind: input, shape index: {}]   ;;  %s822_s3 = inlined_call_operand.vmem [shape: f32[32,1], index: 3, kind: input, shape index: {}]   ;;  %s823_s4 = inlined_call_operand.vmem [shape: f32[32,32], index: 4, kind: input, shape index: {}]   ;;  %s824_s5 = inlined_call_operand.vmem [shape: f32[32,1], index: 5, kind: input, shape index: {}]   ;;  %s825_s6 = inlined_call_operand.vmem [shape: f32[1,32], index: 6, kind: input, shape index: {}]   ;;  %s826_s7 = inlined_call_operand.<no memory space> [shape: f32[1], index: 7, kind: input, shape index: {}]   ;;  %s827_s8 = inlined_call_operand.hbm [shape: f32[1,128], index: 8, kind: output, shape index: {}]  }
   0x1   :  { %v31_v0 = vld [vmem:[%s819_s0] sm:$0xff]  ;;  %v32_v2 = vld [vmem:[%s819_s0 + $0x8] sm:$0xff]  ;;  %v33_v4 = vld [vmem:[%s819_s0 + $0x10] sm:$0xff] }
   0x2   :  { %47 = vxpose.xlu0.b32.start [1/16] (narrow) %v31_v0, 16  ;;  %v79_v1 = vld [vmem:[%s820_s1] sm:$0xff]  ;;  %v80_v3 = vld [vmem:[%s820_s1 + $0x8] sm:$0xff]  ;;  %v81_v5 = vld [vmem:[%s820_s1 + $0x10] sm:$0xff] }
   0x3   :  { %95 = vxpose.xlu1.b32.start [1/16] (narrow) %v79_v1, 8  ;;  %v34_v6 = vld [vmem:[%s819_s0 + $0x18] sm:$0xff] }
   0x6   :  { %48 = vxpose.xlu0.b32.cont [2/16] (narrow) %v32_v2, 16 }
   0x7   :  { %96 = vxpose.xlu1.b32.cont [2/16] (narrow) %v80_v3, 8 }
   0xa   :  { %49 = vxpose.xlu0.b32.cont [3/16] (narrow) %v33_v4, 16 }
   0xb   :  { %97 = vxpose.xlu1.b32.cont [3/16] (narrow) %v81_v5, 8 }
   0xc   :  { %14 = vsyncpa [#allocation4], 0  ;;  %v82_v7 = vld [vmem:[%s820_s1 + $0x18] sm:$0xff]  ;;  %v127_v8 = vld [vmem:[%s821_s2] sm:$0xff]  ;;  %vm155_vm0 = vcmask 162816   ;;  %v598_v34 = vmov 0  }
   0xd   :  { %518 = vmatprep.mubr.msk.f32.mxu0 %vm155_vm0, %v127_v8  ;;  %v35_v9 = vld [vmem:[%s819_s0 + $0x20] sm:$0xff]  ;;  %v36_v11 = vld [vmem:[%s819_s0 + $0x28] sm:$0xff]  ;;  %v37_v13 = vld [vmem:[%s819_s0 + $0x30] sm:$0xff]  ;;  %vm168_vm1 = vcmask 1043456   ;;  %vm289_vm2 = vcmask 261120   ;;  %vm600_vm3 = vmmov 0  }
   0xe   :  { %50 = vxpose.xlu0.b32.cont [4/16] (narrow) %v34_v6, 16  ;;  %v83_v10 = vld [vmem:[%s820_s1 + $0x20] sm:$0xff]  ;;  %v84_v12 = vld [vmem:[%s820_s1 + $0x28] sm:$0xff]  ;;  %v85_v14 = vld [vmem:[%s820_s1 + $0x30] sm:$0xff]  ;;  %v601_v8 = vmov 0.0   ;;  %s602_s10 = smov [#allocation3]  }
   0xf   :  { %98 = vxpose.xlu1.b32.cont [4/16] (narrow) %v82_v7, 8  ;;  %v38_v15 = vld [vmem:[%s819_s0 + $0x38] sm:$0xff]  ;;  %v39_v17 = vld [vmem:[%s819_s0 + $0x40] sm:$0xff]  ;;  %v40_v19 = vld [vmem:[%s819_s0 + $0x48] sm:$0xff]  ;;  %v599_v7 = vmov 0.0|0.0  }
  0x10   :  { %v86_v16 = vld [vmem:[%s820_s1 + $0x38] sm:$0xff]  ;;  %v87_v18 = vld [vmem:[%s820_s1 + $0x40] sm:$0xff]  ;;  %v88_v20 = vld [vmem:[%s820_s1 + $0x48] sm:$0xff] }
  0x11   :  { %v41_v21 = vld [vmem:[%s819_s0 + $0x50] sm:$0xff]  ;;  %v42_v23 = vld [vmem:[%s819_s0 + $0x58] sm:$0xff]  ;;  %v43_v25 = vld [vmem:[%s819_s0 + $0x60] sm:$0xff] }
  0x12   :  { %51 = vxpose.xlu0.b32.cont [5/16] (narrow) %v35_v9, 16  ;;  %v89_v22 = vld [vmem:[%s820_s1 + $0x50] sm:$0xff]  ;;  %v90_v24 = vld [vmem:[%s820_s1 + $0x58] sm:$0xff]  ;;  %v91_v26 = vld [vmem:[%s820_s1 + $0x60] sm:$0xff] }
  0x13   :  { %99 = vxpose.xlu1.b32.cont [5/16] (narrow) %v83_v10, 8  ;;  %v44_v27 = vld [vmem:[%s819_s0 + $0x68] sm:$0xff]  ;;  %v45_v29 = vld [vmem:[%s819_s0 + $0x70] sm:$0xff]  ;;  %v46_v31 = vld [vmem:[%s819_s0 + $0x78] sm:$0xff] }
  0x14   :  { %v92_v28 = vld [vmem:[%s820_s1 + $0x68] sm:$0xff]  ;;  %v93_v30 = vld [vmem:[%s820_s1 + $0x70] sm:$0xff]  ;;  %v94_v32 = vld [vmem:[%s820_s1 + $0x78] sm:$0xff]  ;;  %s474_s1 = sshll.u32 %s602_s10, 4  ;;  %s475_s1 = int_to_ptr.vmem [resolvable:$true] %s474_s1 }
  0x15   :  { %v132_v33 = vld [vmem:[%s822_s3 + $0x8] sm:$0xff]  ;;  %v133_v35 = vld [vmem:[%s822_s3 + $0x10] sm:$0xff]  ;;  %v134_v36 = vld [vmem:[%s822_s3 + $0x18] sm:$0xff]  ;;  %s574_s11 = scalar_lea.vmem %s475_s1, 16  ;;  %s578_s12 = scalar_lea.vmem %s475_s1, 32 }
  0x16   :  { %52 = vxpose.xlu0.b32.cont [6/16] (narrow) %v36_v11, 16  ;;  %v131_v37 = vld [vmem:[%s822_s3] sm:$0xff]  ;;  %v266_v39 = vld [vmem:[%s824_s5 + $0x8] sm:$0xff]  ;;  %v267_v40 = vld [vmem:[%s824_s5 + $0x10] sm:$0xff]  ;;  %p575_p0 = scmp.ne.s32.totalorder %s475_s1, %s574_s11  ;;  %p579_p1 = scmp.lt.s32.totalorder %s475_s1, %s475_s1 }
  0x17   :  { %100 = vxpose.xlu1.b32.cont [6/16] (narrow) %v84_v12, 8  ;;  %v265_v38 = vld [vmem:[%s824_s5] sm:$0xff]  ;;  %v268_v41 = vld [vmem:[%s824_s5 + $0x18] sm:$0xff]  ;;  %v128_v46 = vld [vmem:[%s821_s2 + $0x8] sm:$0xff]  ;;  %p580_p2 = scmp.lt.s32.totalorder %s578_s12, %s574_s11 }
  0x18   :  { %v129_v47 = vld [vmem:[%s821_s2 + $0x10] sm:$0xff]  ;;  %v130_v48 = vld [vmem:[%s821_s2 + $0x18] sm:$0xff]  ;;  %v261_v49 = vld [vmem:[%s823_s4] sm:$0xff] }
  0x19   :  { %532 = vmatprep.mubr.msk.f32.mxu1 %vm289_vm2, %v261_v49  ;;  %v262_v4 = vld [vmem:[%s823_s4 + $0x8] sm:$0xff]  ;;  %v263_v5 = vld [vmem:[%s823_s4 + $0x10] sm:$0xff]  ;;  %v264_v6 = vld [vmem:[%s823_s4 + $0x18] sm:$0xff]  ;;  %p581_p3 = por %p580_p2, %p579_p1 }
  0x1a   :  { %53 = vxpose.xlu0.b32.cont [7/16] (narrow) %v37_v13, 16 }
  0x1b   :  { %101 = vxpose.xlu1.b32.cont [7/16] (narrow) %v85_v14, 8  ;;  %p582_p4 = pnand %p581_p3, %p575_p0 }
  0x1e   :  { %54 = vxpose.xlu0.b32.cont [8/16] (narrow) %v38_v15, 16 }
  0x1f   :  { %102 = vxpose.xlu1.b32.cont [8/16] (narrow) %v86_v16, 8 }
  0x22   :  { %55 = vxpose.xlu0.b32.cont [9/16] (narrow) %v39_v17, 16 }
  0x23   :  { %103 = vxpose.xlu1.b32.cont [9/16] (narrow) %v87_v18, 8 }
  0x26   :  { %56 = vxpose.xlu0.b32.cont [10/16] (narrow) %v40_v19, 16 }
  0x27   :  { %104 = vxpose.xlu1.b32.cont [10/16] (narrow) %v88_v20, 8 }
  0x2a   :  { %57 = vxpose.xlu0.b32.cont [11/16] (narrow) %v41_v21, 16 }
  0x2b   :  { %105 = vxpose.xlu1.b32.cont [11/16] (narrow) %v89_v22, 8 }
  0x2e   :  { %58 = vxpose.xlu0.b32.cont [12/16] (narrow) %v42_v23, 16 }
  0x2f   :  { %106 = vxpose.xlu1.b32.cont [12/16] (narrow) %v90_v24, 8 }
  0x32   :  { %59 = vxpose.xlu0.b32.cont [13/16] (narrow) %v43_v25, 16 }
  0x33   :  { %107 = vxpose.xlu1.b32.cont [13/16] (narrow) %v91_v26, 8 }
  0x36   :  { %60 = vxpose.xlu0.b32.cont [14/16] (narrow) %v44_v27, 16  ;;  %v391_v27 = vld [vmem:[%s825_s6] sm:$0x1] }
  0x37   :  { %108 = vxpose.xlu1.b32.cont [14/16] (narrow) %v92_v28, 8  ;;  %v393_v28 = vstv %s826_s7 }
  0x3a   :  { %61 = vxpose.xlu0.b32.cont [15/16] (narrow) %v45_v29, 16 }
  0x3b   :  { %109 = vxpose.xlu1.b32.cont [15/16] (narrow) %v93_v30, 8 }
  0x3e   :  { %62 = vxpose.xlu0.b32.end [16/16] (narrow) %v46_v31, 16 }
  0x3f   :  { %110 = vxpose.xlu1.b32.end [16/16] (narrow) %v94_v32, 8 }
  0x5d   :  { %573 = vset.pattern.permute.xlu1 %v598_v34 }
  0x5e   :  { %142 = vperm.xlu1 %573, %v132_v33  }
  0x62   :  { %147 = vperm.xlu1 %573, %v133_v35  }
  0x66   :  { %152 = vperm.xlu1 %573, %v134_v36  }
  0x67   :  { %572 = vset.pattern.permute.xlu0 %v598_v34 }
  0x68   :  { %137 = vperm.xlu0 %572, %v131_v37  }
  0x6a   :  { %271 = vperm.xlu1 %573, %v265_v38  }
  0x6c   :  { %276 = vperm.xlu0 %572, %v266_v39  }
  0x6e   :  { %281 = vperm.xlu1 %573, %v267_v40  }
  0x70   :  { %286 = vperm.xlu0 %572, %v268_v41  }
  0x82   :  { %v63_v42 = vpop.trf.xlu0 }
  0x83   :  { %v111_v45 = vpop.trf.xlu1 }
  0x86   :  { %v64_v43 = vpop.trf.xlu0 }
  0x87   :  { %v549_v44 = vpack.c.bf16 %v64_v43, %v63_v42 }
  0x89   :  { %550 = vmatprep.subr.bf16.mxu0 %v549_v44 }
  0x8a   :  { %552 = vmatpush3.bf16.msra.mxu0 %v549_v44 }
  0x8b   :  { %516 = vmatprep.subr.msk.mxu0 %vm168_vm1, %v111_v45 }
  0x8e   :  { %517 = vmatpush3.msk.msra.mxu0 %vm168_vm1, %v111_v45 }
  0x8f   :  { %519 = vmatmul.mubr.msk.f32.vlgmr.msra.gmra.mrb[0].mxu0 %vm155_vm0, %v128_v46  ;;  %561 = vmatprep.subr.bf16.mxu0 %v599_v7 }
  0x90   :  { %521 = vmatprep.mubr.msk.f32.mxu0 %vm155_vm0, %v129_v47 }
  0x93   :  { %522 = vmatmul.mubr.msk.f32.gmra.mrb[2].mxu0 %vm155_vm0, %v130_v48 }
  0x94   :  { %546 = vmatprep.mubr.msk.f32.mxu0 %vm600_vm3, %v601_v8 }
  0xdd   :  { %v143_v50 = vpop.permute.xlu1 %142 }
  0xe1   :  { %v148_v51 = vpop.permute.xlu1 %147 }
  0xe5   :  { %v153_v58 = vpop.permute.xlu1 %152 }
  0xe7   :  { %v138_v53 = vpop.permute.xlu0 %137 }
  0xe9   :  { %v272_v10 = vpop.permute.xlu1 %271 }
  0xeb   :  { %v277_v9 = vpop.permute.xlu0 %276 }
  0xed   :  { %v282_v19 = vpop.permute.xlu1 %281 }
  0xef   :  { %v287_v16 = vpop.permute.xlu0 %286 }
 0x162   :  { %v520_v52 = vpop.f32.mrb[0].mxu0 }
 0x163   :  { %v244_v54 = vadd.f32 %v520_v52, %v143_v50  ;;  %v238_v55 = vpop.f32.mrb[1].mxu0 }
 0x164   :  { %v239_v56 = vadd.f32 %v238_v55, %v138_v53 }
 0x165   :  { %v258_v57 = vmax.f32 %v244_v54, 0.0 }
 0x166   :  { %v257_v59 = vmax.f32 %v239_v56, 0.0  ;;  %v523_v60 = vpop.f32.mrb[2].mxu0 }
 0x167   :  { %v254_v61 = vadd.f32 %v523_v60, %v153_v58  ;;  %v248_v62 = vpop.f32.mrb[3].mxu0 }
 0x168   :  { %v249_v63 = vadd.f32 %v248_v62, %v148_v51  ;;  %v553_v0 = vpack.c.bf16 %v258_v57, %v257_v59 }
 0x169   :  { %v260_v1 = vmax.f32 %v254_v61, 0.0 }
 0x16a   :  { %v259_v2 = vmax.f32 %v249_v63, 0.0  ;;  %554 = vmatprep.subr.bf16.mxu1 %v553_v0 }
 0x16b   :  { %556 = vmatpush3.bf16.msra.mxu1 %v553_v0 }
 0x16c   :  { %v557_v3 = vpack.c.bf16 %v260_v1, %v259_v2 }
 0x16e   :  { %558 = vmatprep.subr.bf16.mxu1 %v557_v3 }
 0x16f   :  { %560 = vmatpush3.bf16.msra.mxu1 %v557_v3 }
 0x172   :  { %533 = vmatmul.mubr.msk.f32.vlgmr.msra.gmra.mrb[0].mxu1 %vm289_vm2, %v262_v4 }
 0x173   :  { %535 = vmatprep.mubr.msk.f32.mxu1 %vm289_vm2, %v263_v5 }
 0x176   :  { %536 = vmatmul.mubr.msk.f32.gmra.mrb[2].mxu1 %vm289_vm2, %v264_v6 }
 0x245   :  { %v534_v11 = vpop.f32.mrb[0].mxu1 }
 0x246   :  { %v374_v12 = vadd.f32 %v534_v11, %v277_v9  ;;  %v368_v13 = vpop.f32.mrb[1].mxu1 }
 0x247   :  { %v369_v14 = vadd.f32 %v368_v13, %v272_v10 }
 0x248   :  { %v388_v15 = vmax.f32 %v374_v12, 0.0 }
 0x249   :  { %v387_v17 = vmax.f32 %v369_v14, 0.0  ;;  %v537_v18 = vpop.f32.mrb[2].mxu1 }
 0x24a   :  { %v384_v20 = vadd.f32 %v537_v18, %v287_v16  ;;  %v378_v21 = vpop.f32.mrb[3].mxu1 }
 0x24b   :  { %v562_v22 = vpack.c.bf16 %v388_v15, %v387_v17  ;;  %v379_v23 = vadd.f32 %v378_v21, %v282_v19 }
 0x24c   :  { %v390_v24 = vmax.f32 %v384_v20, 0.0 }
 0x24d   :  { %v389_v25 = vmax.f32 %v379_v23, 0.0  ;;  %563 = vmatpush3.bf16.msra.mxu0 %v562_v22 }
 0x24e   :  { %564 = vmatprep.subr.bf16.mxu0 %v599_v7 }
 0x24f   :  { %v565_v26 = vpack.c.bf16 %v390_v24, %v389_v25 }
 0x251   :  { %566 = vmatpush3.bf16.msra.mxu0 %v565_v26 }
 0x254   :  { %547 = vmatmul.mubr.msk.f32.vlgmr.msra.gmra.mrb[4].mxu0 %vm289_vm2, %v391_v27 }
 0x327   :  { %v463_v29 = vpop.f32.mrb[4].mxu0 }
 0x328   :  { %v464_v30 = vadd.f32 %v463_v29, %v393_v28  ;;  %v548_v31 = vpop.f32.mrb[5].mxu0 }
 0x32a   :  { %467 = vst [vmem:[#allocation3] sm:$0x1] %v464_v30 }
 0x32b   :  { %585 = shalt.err (!%p582_p4)
}
 0x32c   :  { %s586_s14 = scalar_lea.hbm %s827_s8, 16 }
 0x32d   :  { %p587_p5 = scmp.ne.s32.totalorder %s827_s8, %s586_s14  ;;  %p590_p6 = scmp.lt.u32.totalorder %s586_s14, %s827_s8 }
 0x32f   :  { %p592_p7 = pnand %p590_p6, %p587_p5 }
 0x331   :  { %595 = shalt.err (!%p592_p7)
}
 0x332   :  { %477 = dma.vmem_to_hbm [thread:$0]  %s475_s1, 16, %s827_s8, [#allocation4]  }
 0x333   :  { %596 = dma.done.wait [#allocation4], 16  }
 0x334   :  { %597 = vsyncadd [#allocation4], 4294967280 }
 0x335   :  { %481 = vsyncpa [#allocation4], 1 }

</bundles_post_ra>
